<compile_context>
chip_gen: v7x
topology: tpu7x:2x2x1
jax: 0.10.0
libtpu: 0.0.40
codegen_flags: <defaults>
</compile_context>

<pallas_src>
import jax
import jax.numpy as jnp
from jax.experimental import pallas as pl
from jax.experimental.pallas import tpu as pltpu
from fractions import Fraction


def _round_up(x, m):
    return ((x + m - 1) // m) * m


def _cdiv(a, b):
    return (a + b - 1) // b


# ---------------------------------------------------------------------------
# Per-sample cross-entropy kernel.
#   x_ref:    (C, TILE_N) logits (native dtype), classes on sublanes
#   lbl_ref:  (1, TILE_N) int32 labels (-100 == ignore)
#   loss_ref: (1, TILE_N) float32 per-sample loss (lane-dense output)
# ---------------------------------------------------------------------------
def _ce_kernel(x_ref, lbl_ref, loss_ref):
    x = x_ref[...].astype(jnp.float32)                          # cast in VMEM
    lbl = lbl_ref[...]                                          # (1, T)

    m = jnp.max(x, axis=0, keepdims=True)                       # sublane fold
    xm = x - m                                                  # reused below
    lse = jnp.log(jnp.sum(jnp.exp(xm), axis=0, keepdims=True))  # shifted LSE

    # fused target gather on the shifted logits: x[label] - m
    cls_idx = jax.lax.broadcasted_iota(jnp.int32, x.shape, 0)
    tgt = jnp.sum(jnp.where(cls_idx == lbl, xm, 0.0), axis=0, keepdims=True)

    nll = lse - tgt                                             # = -log_softmax(x)[label]
    # ignore_index (-100) -> 0 (torch reduction='none'); also masks the garbage
    # tail lanes of a partial last logits block (labels there are padded -100).
    loss_ref[...] = jnp.where(lbl >= 0, nll, 0.0)


def _pick_tile_and_vmem(C, in_itemsize, N):
    """Tile width + explicit VMEM limit from physical VMEM, accounting for the
    double-buffered pipeline buffers and in-kernel f32 intermediates."""
    try:
        phys = int(pltpu.get_tpu_info().vmem_capacity_bytes)
    except Exception:
        phys = 64 * 1024 * 1024                    # conservative: v7x per-TC VMEM
    # v7x (64 MiB) -> 48 MiB; v5e/v6e (128 MiB) -> 96 MiB.
    vmem_limit = min((phys * 3) // 4, 96 * 1024 * 1024)

    # Resident bytes per sample column:
    #   2 * C * itemsize   double-buffered logits input
    #   3 * C * 4          f32 cast / exp / masked-select intermediates
    #   2 * (4 + 4)        labels in + f32 loss out (double-buffered)
    per_col = 2 * C * in_itemsize + 3 * C * 4 + 16
    budget = (vmem_limit * 4) // 5                 # headroom for compiler scratch
    tile_n = (budget // per_col) // 128 * 128
    tile_n = max(128, min(32768, tile_n, _round_up(N, 128)))
    # TODO(synk): if even a 128-wide tile exceeds the budget (C in the 1e5+ range),
    # tile the class axis too with a two-pass (max, then sum-exp) LSE.
    return tile_n, vmem_limit


def _per_sample_ce(x_cn, label_row, tile_n, vmem_limit):
    """x_cn: (C, N) native-dtype logits; label_row: (1, n_pad) int32."""
    C, _ = x_cn.shape
    n_pad = label_row.shape[1]
    grid = (n_pad // tile_n,)
    return pl.pallas_call(
        _ce_kernel,
        out_shape=jax.ShapeDtypeStruct((1, n_pad), jnp.float32),
        grid=grid,
        in_specs=[
            # Last logits block may be partial (N need not divide by tile_n);
            # the padded-label mask in the kernel neutralizes its tail lanes.
            pl.BlockSpec((C, tile_n), lambda i: (0, i)),
            pl.BlockSpec((1, tile_n), lambda i: (0, i)),
        ],
        out_specs=pl.BlockSpec((1, tile_n), lambda i: (0, i)),
        compiler_params=pltpu.CompilerParams(
            # TODO(synk): on v7x, verify row tiles shard across both TensorCores;
            # switch to pltpu.CORE_PARALLEL if profiling shows single-TC execution.
            dimension_semantics=("parallel",),
            vmem_limit_bytes=int(vmem_limit),
        ),
    )(x_cn, label_row)


def _ohem_topk_mean(losses, valid, keep_num):
    """mean(top_k(losses, keep_num)) over valid samples, exactly matching
    torch.topk + mean (ties included), without a sort.

    32-step integer bisection on the f32 bit pattern (monotone for >= 0 floats)
    finds the keep_num-th largest loss; one more masked pass forms the sum."""
    sel = jnp.where(valid, jnp.maximum(losses, 0.0), 0.0)        # CE is >= 0
    bits = jax.lax.bitcast_convert_type(sel, jnp.int32)
    bits = jnp.where(valid, bits, jnp.int32(-1))                 # invalid never counted

    def body(_, state):
        lo, hi = state
        mid = lo + (hi - lo + 1) // 2
        cnt = jnp.sum((bits >= mid).astype(jnp.int32))
        ok = cnt >= keep_num
        return jnp.where(ok, mid, lo), jnp.where(ok, hi, mid - 1)

    lo, _ = jax.lax.fori_loop(0, 32, body,
                              (jnp.int32(0), jnp.int32(0x7F800000)))
    thr = jax.lax.bitcast_convert_type(lo, jnp.float32)          # k-th largest loss

    gt = sel > thr                                               # strictly above threshold
    c_gt = jnp.sum(gt.astype(jnp.int32))
    s_gt = jnp.sum(jnp.where(gt, sel, 0.0))
    topk_sum = s_gt + (keep_num - c_gt).astype(jnp.float32) * thr
    # keep_num == 0 -> NaN, matching torch.mean over an empty top-k.
    return jnp.where(keep_num > 0, topk_sum / keep_num.astype(jnp.float32),
                     jnp.float32(jnp.nan))


def class_loss(class_out, label, keep_ratio=0.7, *, logits_in_cn_layout=False):
    """JAX/Pallas equivalent of ClassLoss.forward.

    class_out: (N, C) logits (any float dtype, kept native into the kernel), or
               (C, N) if logits_in_cn_layout=True (skips the relayout copy).
    label:     (N,) or (N, 1) int labels; negative => ignored (-100).
    """
    class_out = jnp.asarray(class_out)
    label = jnp.asarray(label).reshape(-1).astype(jnp.int32)
    label = jnp.where(label < 0, -100, label)

    if logits_in_cn_layout:
        x_cn = class_out                     # (C, N): no extra HBM pass at all
    else:
        x_cn = class_out.T                   # single relayout pass (N,C)->(C,N)
    C, N = x_cn.shape
    assert label.shape[0] == N

    tile_n, vmem_limit = _pick_tile_and_vmem(C, class_out.dtype.itemsize, N)
    n_pad = _cdiv(N, tile_n) * tile_n

    # Pad only the 4-byte/sample labels (no pad pass over the logits).
    label_row = jnp.pad(label, (0, n_pad - N), constant_values=-100).reshape(1, n_pad)

    losses = _per_sample_ce(x_cn, label_row, tile_n, vmem_limit)[0, :N]   # (N,) f32

    # NOTE: labels in [C, inf) are silently treated as valid with loss = logsumexp;
    # PyTorch would raise.  Keep labels in range.
    valid = label >= 0
    num_valid = jnp.sum(valid.astype(jnp.int32))
    frac = Fraction(keep_ratio).limit_denominator(10**6)          # 0.7 -> 7/10
    keep_num = (num_valid * jnp.int32(frac.numerator)) // jnp.int32(frac.denominator)

    return _ohem_topk_mean(losses, valid, keep_num)


if __name__ == "__main__":
    N, C = 128, 16
    key = jax.random.PRNGKey(0)
    k1, k2 = jax.random.split(key)

    class_out = jax.random.normal(k1, (N, C), dtype=jnp.float32)
    # labels in [-2, C): negatives get ignored (mapped to -100)
    label = jax.random.randint(k2, (N, 1), -2, C, dtype=jnp.int32)

    out = jax.jit(class_loss)(class_out, label)
    jax.block_until_ready(out)

    # Small pure-JAX reference check (same OHEM semantics).
    lbl = jnp.where(label.reshape(-1) < 0, -100, label.reshape(-1))
    vmask = lbl >= 0
    logp = jax.nn.log_softmax(class_out.astype(jnp.float32), axis=-1)
    nll = -jnp.take_along_axis(logp, jnp.clip(lbl, 0, C - 1)[:, None], axis=-1)[:, 0]
    nll = jnp.where(vmask, nll, 0.0)
    k = (int(jnp.sum(vmask.astype(jnp.int32))) * 7) // 10
    ref = jnp.mean(jax.lax.top_k(nll, k)[0])
    assert abs(float(out) - float(ref)) <= 1e-4 * max(1.0, abs(float(ref))), (out, ref)

    print("KERNEL_OK")
</pallas_src>

<mosaic_0001>
module attributes {stable_mosaic.version = 11 : i64} {
  func.func @_ce_kernel(%arg0: i32, %arg1: memref<16x128xf32, #tpu.memory_space<vmem>>, %arg2: memref<1x128xi32, #tpu.memory_space<vmem>>, %arg3: memref<1x128xf32, #tpu.memory_space<vmem>>) attributes {dimension_semantics = [#tpu.dimension_semantics<parallel>], iteration_bounds = array<i64: 1>, scalar_prefetch = 0 : i64, scratch_operands = 0 : i64, tpu.core_type = #tpu.core_type<tc>, window_params = [{transform_indices = @transform_0, window_bounds = array<i64: 16, 128>}, {transform_indices = @transform_1, window_bounds = array<i64: 1, 128>}, {transform_indices = @transform_2, window_bounds = array<i64: 1, 128>}]} {
    %c0 = arith.constant 0 : index
    %c0_0 = arith.constant 0 : index
    %0 = vector.load %arg1[%c0, %c0_0] : memref<16x128xf32, #tpu.memory_space<vmem>>, vector<16x128xf32>
    %c0_1 = arith.constant 0 : index
    %c0_2 = arith.constant 0 : index
    %1 = vector.load %arg2[%c0_1, %c0_2] : memref<1x128xi32, #tpu.memory_space<vmem>>, vector<1x128xi32>
    %cst = arith.constant dense<0xFF800000> : vector<128xf32>
    %2 = vector.multi_reduction <maximumf>, %0, %cst [0] : vector<16x128xf32> to vector<128xf32>
    %3 = vector.shape_cast %2 : vector<128xf32> to vector<1x128xf32>
    %4 = vector.broadcast %3 : vector<1x128xf32> to vector<16x128xf32>
    %5 = arith.subf %0, %4 : vector<16x128xf32>
    %6 = math.exp %5 : vector<16x128xf32>
    %cst_3 = arith.constant dense<0.000000e+00> : vector<128xf32>
    %7 = vector.multi_reduction <add>, %6, %cst_3 [0] : vector<16x128xf32> to vector<128xf32>
    %8 = vector.shape_cast %7 : vector<128xf32> to vector<1x128xf32>
    %9 = math.log %8 : vector<1x128xf32>
    %10 = tpu.iota {dimensions = array<i32: 0>} : vector<16x128xi32>
    %11 = vector.broadcast %1 : vector<1x128xi32> to vector<16x128xi32>
    %12 = arith.cmpi eq, %10, %11 : vector<16x128xi32>
    %cst_4 = arith.constant 0.000000e+00 : f32
    %13 = vector.broadcast %cst_4 : f32 to vector<16x128xf32>
    %14 = arith.select %12, %5, %13 : vector<16x128xi1>, vector<16x128xf32>
    %cst_5 = arith.constant dense<0.000000e+00> : vector<128xf32>
    %15 = vector.multi_reduction <add>, %14, %cst_5 [0] : vector<16x128xf32> to vector<128xf32>
    %16 = vector.shape_cast %15 : vector<128xf32> to vector<1x128xf32>
    %17 = arith.subf %9, %16 : vector<1x128xf32>
    %c0_i32 = arith.constant 0 : i32
    %18 = vector.broadcast %c0_i32 : i32 to vector<1x128xi32>
    %19 = arith.cmpi sge, %1, %18 : vector<1x128xi32>
    %cst_6 = arith.constant 0.000000e+00 : f32
    %20 = vector.broadcast %cst_6 : f32 to vector<1x128xf32>
    %21 = arith.select %19, %17, %20 : vector<1x128xi1>, vector<1x128xf32>
    %c0_7 = arith.constant 0 : index
    %c0_8 = arith.constant 0 : index
    %22 = vector.load %arg3[%c0_7, %c0_8] : memref<1x128xf32, #tpu.memory_space<vmem>>, vector<1x128xf32>
    tpu.vector_store %arg3[%c0_7, %c0_8], %21 {strides = array<i32>} : memref<1x128xf32, #tpu.memory_space<vmem>>, vector<1x128xf32>,
    return
  }
  func.func @transform_0(%arg0: i32) -> (i32, i32) {
    %c0_i32 = arith.constant 0 : i32
    %c0_i32_0 = arith.constant 0 : i32
    return %c0_i32, %arg0 : i32, i32
  }
  func.func @transform_1(%arg0: i32) -> (i32, i32) {
    %c0_i32 = arith.constant 0 : i32
    %c0_i32_0 = arith.constant 0 : i32
    return %c0_i32, %arg0 : i32, i32
  }
  func.func @transform_2(%arg0: i32) -> (i32, i32) {
    %c0_i32 = arith.constant 0 : i32
    %c0_i32_0 = arith.constant 0 : i32
    return %c0_i32, %arg0 : i32, i32
  }
}

</mosaic_0001>

<bundles_post_ra>
// kernel: class_loss.1
= control target key start
LH: loop header
LB: loop body
LE: loop exit
PB: predicated region body
PF: predicated region fallthrough
CT: control target
= control target key end

     0   :  { %7 = vsyncpa [#allocation3], 0  ;;  %s110_s9 = smov [#allocation2]   ;;  %s146_s0 = inlined_call_operand.hbm [shape: f32[16,128], index: 0, kind: input, shape index: {}]   ;;  %s147_s1 = inlined_call_operand.vmem [shape: s32[1,128], index: 1, kind: input, shape index: {}]   ;;  %s148_s2 = inlined_call_operand.vmem [shape: f32[1,128], index: 2, kind: output, shape index: {}]  }
   0x1   :  { %s13_s10 = sshll.u32 %s110_s9, 4  ;;  %s86_s13 = scalar_lea.hbm %s146_s0, 256  ;;  %s14_s10 = int_to_ptr.vmem [resolvable:$true] %s13_s10 }
   0x2   :  { %p87_p0 = scmp.ne.s32.totalorder %s146_s0, %s86_s13  ;;  %p90_p1 = scmp.lt.u32.totalorder %s86_s13, %s146_s0 }
   0x4   :  { %p92_p2 = pnand %p90_p1, %p87_p0 }
   0x6   :  { %95 = shalt.err (!%p92_p2)
}
   0x7   :  { %s96_s18 = scalar_lea.vmem %s14_s10, 256  ;;  %p101_p4 = scmp.lt.s32.totalorder %s14_s10, %s14_s10 }
   0x8   :  { %p97_p3 = scmp.ne.s32.totalorder %s14_s10, %s96_s18  ;;  %p102_p5 = scmp.lt.s32.totalorder %s96_s18, %s96_s18 }
   0xa   :  { %p103_p6 = por %p102_p5, %p101_p4 }
   0xc   :  { %p104_p7 = pnand %p103_p6, %p97_p3 }
   0xe   :  { %107 = shalt.err (!%p104_p7)
}
   0xf   :  { %s111_s19 = smov 128   ;;  %s112_s20 = smov 8  }
  0x10   :  { %19 = dma.hbm_to_vmem [thread:$0]  %s146_s0, 256, %s14_s10, [#allocation3], %s111_s19, %s111_s19, %s112_s20  }
  0x11   :  { %108 = dma.done.wait [#allocation3], 256  }
  0x12   :  { %109 = vsyncadd [#allocation3], 4294967040  ;;  %v25_v0 = vld [vmem:[#allocation2] sm:$0xff]  ;;  %v26_v1 = vld [vmem:[#allocation2 + $0x8] sm:$0xff]  ;;  %v50_v6 = vlaneseq }
  0x13   :  { %v28_v2 = vmax.f32 %v25_v0, %v26_v1  ;;  %v27_v14 = vld [vmem:[%s147_s1] sm:$0x1] }
  0x14   :  { %v51_v9 = vshrl.u32 %v50_v6, 7  ;;  %vm69_vm2 = vcmp.ge.s32.totalorder %v27_v14, 0 }
  0x15   :  { %v29_v3 = vrot.slane %v28_v2, 4 }
  0x16   :  { %v55_v13 = vsub.s32 0, %v51_v9  ;;  %v52_v17 = vadd.s32 8, %v51_v9 }
  0x17   :  { %v30_v4 = vmax.f32 %v28_v2, %v29_v3 }
  0x18   :  { %v56_v18 = vrot.slane %v27_v14, %v55_v13 }
  0x19   :  { %v31_v5 = vrot.slane %v30_v4, 2 }
  0x1a   :  { %vm57_vm0 = vcmp.eq.s32.totalorder %v51_v9, %v56_v18  ;;  %vm58_vm1 = vcmp.eq.s32.totalorder %v52_v17, %v56_v18 }
  0x1b   :  { %v32_v7 = vmax.f32 %v30_v4, %v31_v5 }
  0x1d   :  { %v33_v8 = vrot.slane %v32_v7, 1 }
  0x1f   :  { %v34_v10 = vmax.f32 %v32_v7, %v33_v8 }
  0x21   :  { %v35_v11 = vsub.f32 %v25_v0, %v34_v10  ;;  %v36_v12 = vsub.f32 %v26_v1, %v34_v10 }
  0x23   :  { %v37_v15 = vmul.f32 1.442695, %v35_v11  ;;  %v39_v16 = vmul.f32 1.442695, %v36_v12  ;;  %v59_v19 = vsel %vm57_vm0, %v35_v11, 0.0  ;;  %v60_v20 = vsel %vm58_vm1, %v36_v12, 0.0 }
  0x24   :  { %v61_v23 = vadd.f32 %v60_v20, %v59_v19 }
  0x25   :  { %80 = vpow2.f32 %v37_v15 }
  0x26   :  { %82 = vpow2.f32 %v39_v16  ;;  %v62_v26 = vrot.slane %v61_v23, 4 }
  0x28   :  { %v63_v29 = vadd.f32 %v62_v26, %v61_v23 }
  0x2a   :  { %v64_v32 = vrot.slane %v63_v29, 2 }
  0x2c   :  { %v65_v34 = vadd.f32 %v64_v32, %v63_v29 }
  0x2e   :  { %v66_v35 = vrot.slane %v65_v34, 1 }
  0x2f   :  { %v81_v21 = vpop.eup %80 }
  0x30   :  { %v83_v22 = vpop.eup %82  ;;  %v67_v36 = vadd.f32 %v66_v35, %v65_v34 }
  0x31   :  { %v41_v24 = vadd.f32 %v83_v22, %v81_v21 }
  0x33   :  { %v42_v25 = vrot.slane %v41_v24, 4 }
  0x35   :  { %v43_v27 = vadd.f32 %v42_v25, %v41_v24 }
  0x37   :  { %v44_v28 = vrot.slane %v43_v27, 2 }
  0x39   :  { %v45_v30 = vadd.f32 %v44_v28, %v43_v27 }
  0x3b   :  { %v46_v31 = vrot.slane %v45_v30, 1 }
  0x3d   :  { %v47_v33 = vadd.f32 %v46_v31, %v45_v30 }
  0x3f   :  { %84 = vlog2.f32 %v47_v33 }
  0x49   :  { %v85_v37 = vpop.eup %84 }
  0x4a   :  { %v49_v38 = vmul.f32 0.6931472, %v85_v37 }
  0x4c   :  { %v68_v39 = vsub.f32 %v49_v38, %v67_v36 }
  0x4e   :  { %v70_v40 = vsel %vm69_vm2, %v68_v39, 0.0 }
  0x4f   :  { %71 = vst [vmem:[%s148_s2] sm:$0x1] %v70_v40 }
  0x50   :  { %76 = vsyncpa [#allocation3], 1 }

</bundles_post_ra>
